<compile_context>
chip_gen: v7x
topology: tpu7x:2x2x1
jax: 0.10.0
libtpu: 0.0.40
codegen_flags: <defaults>
</compile_context>

<pallas_src>
import jax
import jax.numpy as jnp
from jax import lax
from jax.experimental import pallas as pl
from jax.experimental.pallas import tpu as pltpu

L_IN = 200
L1 = L_IN - 2        # 198 after first k=3 conv
L2 = L1 - 2          # 196 after second k=3 conv
C1 = 4
C2 = 2
NUM_CLASSES = 2
FLAT = C2 * L2       # 392

L_PAD = 256          # lane width of every activation slab (exactly 2 lane tiles)
CLS_PAD = 8          # classes padded 2 -> 8 (one sublane tile) in the transposed output


def anet_kernel(x_ref, w1_ref, b1_ref, w2_ref, b2_ref, wft_ref, bfc_ref, out_ref):
    # x_ref  : (TB, 256) VMEM f32  (batch on sublanes, zero-padded length on lanes)
    # w1_ref : (12,) SMEM   b1_ref: (4,) SMEM   w2_ref: (24,) SMEM   b2_ref: (2,) SMEM
    # wft_ref: (2, 8, 256) VMEM    (per-channel classifier weight, classes padded to 8,
    #                               lanes t >= 196 zeroed -> kills garbage/wrap lanes)
    # bfc_ref: (8, 1) VMEM
    # out_ref: (8, TB) VMEM        (out[c, b] = logit of class c for batch row b)
    x = x_ref[...]                                            # (TB, 256)

    # Shifted views: x_sh[k][b, t] = x[b, (t + k) % 256].  Wrap lanes are t >= 254,
    # which is inside the garbage region masked by the zero classifier columns.
    x_sh = [x, jnp.roll(x, -1, axis=-1), jnp.roll(x, -2, axis=-1)]

    # conv2 accumulators start at the conv2 bias (bias folded into init).
    acc2 = [jnp.full(x.shape, b2_ref[o], dtype=jnp.float32) for o in range(C2)]

    # conv1 (1->4, k=3) + ReLU and conv2 (4->2, k=3) as scalar-weight MACs on
    # lane-dense (TB, 256) slabs; weights read as scalars from SMEM.  Static unroll.
    for c in range(C1):
        h1c = (x_sh[0] * w1_ref[3 * c + 0]
               + x_sh[1] * w1_ref[3 * c + 1]
               + x_sh[2] * w1_ref[3 * c + 2])
        h1c = jnp.maximum(h1c + b1_ref[c], 0.0)               # valid lanes 0..197
        h1_sh = [h1c, jnp.roll(h1c, -1, axis=-1), jnp.roll(h1c, -2, axis=-1)]
        for o in range(C2):
            acc2[o] = (acc2[o]
                       + h1_sh[0] * w2_ref[(o * C1 + c) * 3 + 0]
                       + h1_sh[1] * w2_ref[(o * C1 + c) * 3 + 1]
                       + h1_sh[2] * w2_ref[(o * C1 + c) * 3 + 2])

    # Flatten (channel-major, matches torch .view(B, -1)) + Linear(392 -> 2) as two
    # accumulated MXU matmuls in A @ B^T form (contract the 256-lane axis of both),
    # producing a transposed, lane-dense (8, TB) output.  Zero-padded weight columns
    # (t >= 196) and zero-padded class rows make the result exact.
    acc = None
    for o in range(C2):
        h2o = jnp.maximum(acc2[o], 0.0)                       # valid lanes 0..195
        d = lax.dot_general(
            wft_ref[o], h2o,
            dimension_numbers=(((1,), (1,)), ((), ())),       # contract lane axis of both
            preferred_element_type=jnp.float32)               # (8, TB)
        acc = d if acc is None else acc + d
    out_ref[...] = acc + bfc_ref[...]


def _round_up(a, m):
    return (a + m - 1) // m * m


def _tb_max():
    """Per-generation batch-tile cap: 128 MiB-VMEM parts (v5e/v6e) take 1024 rows,
    64 MiB v7x stays at 512.  Falls back to the conservative 512."""
    try:
        vmem = pltpu.get_tpu_info().vmem_capacity_bytes
        return 1024 if vmem >= (96 << 20) else 512
    except Exception:
        return 512


def _choose_tiles(B, tb_max):
    """Balanced batch tiles: avoid the 'B slightly above TB_MAX -> 2x padding' cliff and
    give v7x megacore >= 2 grid steps once the batch is non-trivial."""
    n_steps = max(1, -(-B // tb_max))
    if B > 256 and n_steps < 2:
        n_steps = 2
    tb = _round_up(-(-B // n_steps), 8)
    return tb, n_steps


def anet_forward(x, w1, b1, w2, b2, wf, bf):
    """x: (B,1,200); w1: (4,1,3); b1: (4,); w2: (2,4,3); b2: (2,); wf: (2,392); bf: (2,)."""
    B = x.shape[0]
    f32 = jnp.float32

    tb_max = _tb_max()
    tb, n_steps = _choose_tiles(B, tb_max)
    b_pad = tb * n_steps

    # ---- host-side layout plumbing only (no module compute hoisted out of the kernel) ----
    x2 = x.reshape(B, L_IN).astype(f32)
    x2 = jnp.pad(x2, ((0, b_pad - B), (0, L_PAD - L_IN)))        # (B_pad, 256), zero padded

    w1_s = w1.astype(f32).reshape(C1 * 3)                        # (12,) index 3*c + k
    b1_s = b1.astype(f32).reshape(C1)                            # (4,)
    w2_s = w2.astype(f32).reshape(C2 * C1 * 3)                   # (24,) index (o*4 + c)*3 + k
    b2_s = b2.astype(f32).reshape(C2)                            # (2,)

    # Channel-major flatten order of PyTorch view(B, -1): flat index = o*196 + t.
    wf_k = wf.astype(f32).reshape(NUM_CLASSES, C2, L2)           # (2, 2, 196)
    wf_k = jnp.pad(wf_k, ((0, 0), (0, 0), (0, L_PAD - L2)))      # (2, 2, 256) zero t>=196
    wft = jnp.transpose(wf_k, (1, 0, 2))                         # (channel, class, 256)
    wft = jnp.pad(wft, ((0, 0), (0, CLS_PAD - NUM_CLASSES), (0, 0)))   # (2, 8, 256)
    bfc = jnp.pad(bf.astype(f32).reshape(NUM_CLASSES, 1),
                  ((0, CLS_PAD - NUM_CLASSES), (0, 0)))          # (8, 1)

    smem = pl.BlockSpec(memory_space=pltpu.MemorySpace.SMEM)
    vmem_limit = (64 if tb_max >= 1024 else 32) * 1024 * 1024

    out2d = pl.pallas_call(
        anet_kernel,
        out_shape=jax.ShapeDtypeStruct((CLS_PAD * n_steps, tb), f32),
        grid=(n_steps,),
        in_specs=[
            pl.BlockSpec((tb, L_PAD), lambda i: (i, 0)),               # x batch tile
            smem, smem, smem, smem,                                    # conv weights / biases
            pl.BlockSpec((C2, CLS_PAD, L_PAD), lambda i: (0, 0, 0)),   # classifier weight
            pl.BlockSpec((CLS_PAD, 1), lambda i: (0, 0)),              # classifier bias column
        ],
        out_specs=pl.BlockSpec((CLS_PAD, tb), lambda i: (i, 0)),       # compact (8, tb) tile
        compiler_params=pltpu.CompilerParams(
            dimension_semantics=("parallel",),
            vmem_limit_bytes=vmem_limit,
        ),
    )(x2, w1_s, b1_s, w2_s, b2_s, wft, bfc)

    # Unpack the compact transposed output: out2d[8*i + c, j] = logit(c) of row i*tb + j.
    out3 = out2d.reshape(n_steps, CLS_PAD, tb)[:, :NUM_CLASSES, :]     # (n, 2, tb)
    logits = jnp.transpose(out3, (0, 2, 1)).reshape(b_pad, NUM_CLASSES)
    return logits[:B]


def anet_reference(x, w1, b1, w2, b2, wf, bf):
    # Pure-JAX reference (NCL layout) to validate the kernel.
    h1 = lax.conv_general_dilated(
        x, w1, window_strides=(1,), padding='VALID',
        dimension_numbers=('NCH', 'OIH', 'NCH'))
    h1 = jnp.maximum(h1 + b1.reshape(1, C1, 1), 0.0)
    h2 = lax.conv_general_dilated(
        h1, w2, window_strides=(1,), padding='VALID',
        dimension_numbers=('NCH', 'OIH', 'NCH'))
    h2 = jnp.maximum(h2 + b2.reshape(1, C2, 1), 0.0)
    flat = h2.reshape(h2.shape[0], -1)
    return flat @ wf.T + bf.reshape(1, -1)


if __name__ == "__main__":
    key = jax.random.PRNGKey(0)
    kx, k1, k2, k3, k4, k5, k6 = jax.random.split(key, 7)

    B = 2
    x = jax.random.normal(kx, (B, 1, L_IN), dtype=jnp.float32)

    # Deterministic synthetic parameters; shapes match the nn.Module exactly.
    w1 = jax.random.normal(k1, (C1, 1, 3), dtype=jnp.float32) * 0.1        # Conv1d(1,4,3) weight
    b1 = jax.random.normal(k2, (C1,), dtype=jnp.float32) * 0.1             # Conv1d(1,4,3) bias
    w2 = jax.random.normal(k3, (C2, C1, 3), dtype=jnp.float32) * 0.1       # Conv1d(4,2,3) weight
    b2 = jax.random.normal(k4, (C2,), dtype=jnp.float32) * 0.1             # Conv1d(4,2,3) bias
    wf = jax.random.normal(k5, (NUM_CLASSES, FLAT), dtype=jnp.float32) * 0.05  # Linear weight
    bf = jax.random.normal(k6, (NUM_CLASSES,), dtype=jnp.float32) * 0.05       # Linear bias

    out = anet_forward(x, w1, b1, w2, b2, wf, bf)
    out = jax.block_until_ready(out)

    ref = anet_reference(x, w1, b1, w2, b2, wf, bf)
    assert out.shape == (B, NUM_CLASSES)
    assert jnp.allclose(out, ref, atol=5e-4, rtol=5e-4), (out, ref)

    print("KERNEL_OK")
</pallas_src>

<mosaic_0001>
module attributes {stable_mosaic.version = 11 : i64} {
  func.func @anet_kernel(%arg0: i32, %arg1: memref<8x256xf32, #tpu.memory_space<vmem>>, %arg2: memref<12xf32, #tpu.memory_space<smem>>, %arg3: memref<4xf32, #tpu.memory_space<smem>>, %arg4: memref<24xf32, #tpu.memory_space<smem>>, %arg5: memref<2xf32, #tpu.memory_space<smem>>, %arg6: memref<2x8x256xf32, #tpu.memory_space<vmem>>, %arg7: memref<8x1xf32, #tpu.memory_space<vmem>>, %arg8: memref<8x8xf32, #tpu.memory_space<vmem>>) attributes {dimension_semantics = [#tpu.dimension_semantics<parallel>], iteration_bounds = array<i64: 1>, scalar_prefetch = 0 : i64, scratch_operands = 0 : i64, tpu.core_type = #tpu.core_type<tc>, window_params = [{transform_indices = @transform_0, window_bounds = array<i64: 8, 256>}, {transform_indices = @transform_1, window_bounds = array<i64: 12>}, {transform_indices = @transform_2, window_bounds = array<i64: 4>}, {transform_indices = @transform_3, window_bounds = array<i64: 24>}, {transform_indices = @transform_4, window_bounds = array<i64: 2>}, {pipeline_mode = #tpu.pipeline_mode<synchronous>, transform_indices = @transform_5, window_bounds = array<i64: 2, 8, 256>}, {pipeline_mode = #tpu.pipeline_mode<synchronous>, transform_indices = @transform_6, window_bounds = array<i64: 8, 1>}, {transform_indices = @transform_7, window_bounds = array<i64: 8, 8>}]} {
    %c0 = arith.constant 0 : index
    %c0_0 = arith.constant 0 : index
    %0 = vector.load %arg1[%c0, %c0_0] : memref<8x256xf32, #tpu.memory_space<vmem>>, vector<8x256xf32>
    %1 = vector.extract_strided_slice %0 {offsets = [0, 1], sizes = [8, 255], strides = [1, 1]} : vector<8x256xf32> to vector<8x255xf32>
    %2 = vector.extract_strided_slice %0 {offsets = [0, 0], sizes = [8, 1], strides = [1, 1]} : vector<8x256xf32> to vector<8x1xf32>
    %3 = tpu.concatenate %1, %2 in 1 : vector<8x255xf32>, vector<8x1xf32> -> vector<8x256xf32>
    %4 = vector.extract_strided_slice %0 {offsets = [0, 2], sizes = [8, 254], strides = [1, 1]} : vector<8x256xf32> to vector<8x254xf32>
    %5 = vector.extract_strided_slice %0 {offsets = [0, 0], sizes = [8, 2], strides = [1, 1]} : vector<8x256xf32> to vector<8x2xf32>
    %6 = tpu.concatenate %4, %5 in 1 : vector<8x254xf32>, vector<8x2xf32> -> vector<8x256xf32>
    %c0_1 = arith.constant 0 : index
    %7 = memref.load %arg5[%c0_1] : memref<2xf32, #tpu.memory_space<smem>>
    %8 = vector.broadcast %7 : f32 to vector<8x256xf32>
    %c1 = arith.constant 1 : index
    %9 = memref.load %arg5[%c1] : memref<2xf32, #tpu.memory_space<smem>>
    %10 = vector.broadcast %9 : f32 to vector<8x256xf32>
    %c0_2 = arith.constant 0 : index
    %11 = memref.load %arg2[%c0_2] : memref<12xf32, #tpu.memory_space<smem>>
    %12 = vector.broadcast %11 : f32 to vector<8x256xf32>
    %13 = arith.mulf %0, %12 : vector<8x256xf32>
    %c1_3 = arith.constant 1 : index
    %14 = memref.load %arg2[%c1_3] : memref<12xf32, #tpu.memory_space<smem>>
    %15 = vector.broadcast %14 : f32 to vector<8x256xf32>
    %16 = arith.mulf %3, %15 : vector<8x256xf32>
    %17 = arith.addf %13, %16 : vector<8x256xf32>
    %c2 = arith.constant 2 : index
    %18 = memref.load %arg2[%c2] : memref<12xf32, #tpu.memory_space<smem>>
    %19 = vector.broadcast %18 : f32 to vector<8x256xf32>
    %20 = arith.mulf %6, %19 : vector<8x256xf32>
    %21 = arith.addf %17, %20 : vector<8x256xf32>
    %c0_4 = arith.constant 0 : index
    %22 = memref.load %arg3[%c0_4] : memref<4xf32, #tpu.memory_space<smem>>
    %23 = vector.broadcast %22 : f32 to vector<8x256xf32>
    %24 = arith.addf %21, %23 : vector<8x256xf32>
    %cst = arith.constant 0.000000e+00 : f32
    %25 = vector.broadcast %cst : f32 to vector<8x256xf32>
    %26 = arith.maximumf %24, %25 : vector<8x256xf32>
    %27 = vector.extract_strided_slice %26 {offsets = [0, 1], sizes = [8, 255], strides = [1, 1]} : vector<8x256xf32> to vector<8x255xf32>
    %28 = vector.extract_strided_slice %26 {offsets = [0, 0], sizes = [8, 1], strides = [1, 1]} : vector<8x256xf32> to vector<8x1xf32>
    %29 = tpu.concatenate %27, %28 in 1 : vector<8x255xf32>, vector<8x1xf32> -> vector<8x256xf32>
    %30 = vector.extract_strided_slice %26 {offsets = [0, 2], sizes = [8, 254], strides = [1, 1]} : vector<8x256xf32> to vector<8x254xf32>
    %31 = vector.extract_strided_slice %26 {offsets = [0, 0], sizes = [8, 2], strides = [1, 1]} : vector<8x256xf32> to vector<8x2xf32>
    %32 = tpu.concatenate %30, %31 in 1 : vector<8x254xf32>, vector<8x2xf32> -> vector<8x256xf32>
    %c0_5 = arith.constant 0 : index
    %33 = memref.load %arg4[%c0_5] : memref<24xf32, #tpu.memory_space<smem>>
    %34 = vector.broadcast %33 : f32 to vector<8x256xf32>
    %35 = arith.mulf %26, %34 : vector<8x256xf32>
    %36 = arith.addf %8, %35 : vector<8x256xf32>
    %c1_6 = arith.constant 1 : index
    %37 = memref.load %arg4[%c1_6] : memref<24xf32, #tpu.memory_space<smem>>
    %38 = vector.broadcast %37 : f32 to vector<8x256xf32>
    %39 = arith.mulf %29, %38 : vector<8x256xf32>
    %40 = arith.addf %36, %39 : vector<8x256xf32>
    %c2_7 = arith.constant 2 : index
    %41 = memref.load %arg4[%c2_7] : memref<24xf32, #tpu.memory_space<smem>>
    %42 = vector.broadcast %41 : f32 to vector<8x256xf32>
    %43 = arith.mulf %32, %42 : vector<8x256xf32>
    %44 = arith.addf %40, %43 : vector<8x256xf32>
    %c12 = arith.constant 12 : index
    %45 = memref.load %arg4[%c12] : memref<24xf32, #tpu.memory_space<smem>>
    %46 = vector.broadcast %45 : f32 to vector<8x256xf32>
    %47 = arith.mulf %26, %46 : vector<8x256xf32>
    %48 = arith.addf %10, %47 : vector<8x256xf32>
    %c13 = arith.constant 13 : index
    %49 = memref.load %arg4[%c13] : memref<24xf32, #tpu.memory_space<smem>>
    %50 = vector.broadcast %49 : f32 to vector<8x256xf32>
    %51 = arith.mulf %29, %50 : vector<8x256xf32>
    %52 = arith.addf %48, %51 : vector<8x256xf32>
    %c14 = arith.constant 14 : index
    %53 = memref.load %arg4[%c14] : memref<24xf32, #tpu.memory_space<smem>>
    %54 = vector.broadcast %53 : f32 to vector<8x256xf32>
    %55 = arith.mulf %32, %54 : vector<8x256xf32>
    %56 = arith.addf %52, %55 : vector<8x256xf32>
    %c3 = arith.constant 3 : index
    %57 = memref.load %arg2[%c3] : memref<12xf32, #tpu.memory_space<smem>>
    %58 = vector.broadcast %57 : f32 to vector<8x256xf32>
    %59 = arith.mulf %0, %58 : vector<8x256xf32>
    %c4 = arith.constant 4 : index
    %60 = memref.load %arg2[%c4] : memref<12xf32, #tpu.memory_space<smem>>
    %61 = vector.broadcast %60 : f32 to vector<8x256xf32>
    %62 = arith.mulf %3, %61 : vector<8x256xf32>
    %63 = arith.addf %59, %62 : vector<8x256xf32>
    %c5 = arith.constant 5 : index
    %64 = memref.load %arg2[%c5] : memref<12xf32, #tpu.memory_space<smem>>
    %65 = vector.broadcast %64 : f32 to vector<8x256xf32>
    %66 = arith.mulf %6, %65 : vector<8x256xf32>
    %67 = arith.addf %63, %66 : vector<8x256xf32>
    %c1_8 = arith.constant 1 : index
    %68 = memref.load %arg3[%c1_8] : memref<4xf32, #tpu.memory_space<smem>>
    %69 = vector.broadcast %68 : f32 to vector<8x256xf32>
    %70 = arith.addf %67, %69 : vector<8x256xf32>
    %cst_9 = arith.constant 0.000000e+00 : f32
    %71 = vector.broadcast %cst_9 : f32 to vector<8x256xf32>
    %72 = arith.maximumf %70, %71 : vector<8x256xf32>
    %73 = vector.extract_strided_slice %72 {offsets = [0, 1], sizes = [8, 255], strides = [1, 1]} : vector<8x256xf32> to vector<8x255xf32>
    %74 = vector.extract_strided_slice %72 {offsets = [0, 0], sizes = [8, 1], strides = [1, 1]} : vector<8x256xf32> to vector<8x1xf32>
    %75 = tpu.concatenate %73, %74 in 1 : vector<8x255xf32>, vector<8x1xf32> -> vector<8x256xf32>
    %76 = vector.extract_strided_slice %72 {offsets = [0, 2], sizes = [8, 254], strides = [1, 1]} : vector<8x256xf32> to vector<8x254xf32>
    %77 = vector.extract_strided_slice %72 {offsets = [0, 0], sizes = [8, 2], strides = [1, 1]} : vector<8x256xf32> to vector<8x2xf32>
    %78 = tpu.concatenate %76, %77 in 1 : vector<8x254xf32>, vector<8x2xf32> -> vector<8x256xf32>
    %c3_10 = arith.constant 3 : index
    %79 = memref.load %arg4[%c3_10] : memref<24xf32, #tpu.memory_space<smem>>
    %80 = vector.broadcast %79 : f32 to vector<8x256xf32>
    %81 = arith.mulf %72, %80 : vector<8x256xf32>
    %82 = arith.addf %44, %81 : vector<8x256xf32>
    %c4_11 = arith.constant 4 : index
    %83 = memref.load %arg4[%c4_11] : memref<24xf32, #tpu.memory_space<smem>>
    %84 = vector.broadcast %83 : f32 to vector<8x256xf32>
    %85 = arith.mulf %75, %84 : vector<8x256xf32>
    %86 = arith.addf %82, %85 : vector<8x256xf32>
    %c5_12 = arith.constant 5 : index
    %87 = memref.load %arg4[%c5_12] : memref<24xf32, #tpu.memory_space<smem>>
    %88 = vector.broadcast %87 : f32 to vector<8x256xf32>
    %89 = arith.mulf %78, %88 : vector<8x256xf32>
    %90 = arith.addf %86, %89 : vector<8x256xf32>
    %c15 = arith.constant 15 : index
    %91 = memref.load %arg4[%c15] : memref<24xf32, #tpu.memory_space<smem>>
    %92 = vector.broadcast %91 : f32 to vector<8x256xf32>
    %93 = arith.mulf %72, %92 : vector<8x256xf32>
    %94 = arith.addf %56, %93 : vector<8x256xf32>
    %c16 = arith.constant 16 : index
    %95 = memref.load %arg4[%c16] : memref<24xf32, #tpu.memory_space<smem>>
    %96 = vector.broadcast %95 : f32 to vector<8x256xf32>
    %97 = arith.mulf %75, %96 : vector<8x256xf32>
    %98 = arith.addf %94, %97 : vector<8x256xf32>
    %c17 = arith.constant 17 : index
    %99 = memref.load %arg4[%c17] : memref<24xf32, #tpu.memory_space<smem>>
    %100 = vector.broadcast %99 : f32 to vector<8x256xf32>
    %101 = arith.mulf %78, %100 : vector<8x256xf32>
    %102 = arith.addf %98, %101 : vector<8x256xf32>
    %c6 = arith.constant 6 : index
    %103 = memref.load %arg2[%c6] : memref<12xf32, #tpu.memory_space<smem>>
    %104 = vector.broadcast %103 : f32 to vector<8x256xf32>
    %105 = arith.mulf %0, %104 : vector<8x256xf32>
    %c7 = arith.constant 7 : index
    %106 = memref.load %arg2[%c7] : memref<12xf32, #tpu.memory_space<smem>>
    %107 = vector.broadcast %106 : f32 to vector<8x256xf32>
    %108 = arith.mulf %3, %107 : vector<8x256xf32>
    %109 = arith.addf %105, %108 : vector<8x256xf32>
    %c8 = arith.constant 8 : index
    %110 = memref.load %arg2[%c8] : memref<12xf32, #tpu.memory_space<smem>>
    %111 = vector.broadcast %110 : f32 to vector<8x256xf32>
    %112 = arith.mulf %6, %111 : vector<8x256xf32>
    %113 = arith.addf %109, %112 : vector<8x256xf32>
    %c2_13 = arith.constant 2 : index
    %114 = memref.load %arg3[%c2_13] : memref<4xf32, #tpu.memory_space<smem>>
    %115 = vector.broadcast %114 : f32 to vector<8x256xf32>
    %116 = arith.addf %113, %115 : vector<8x256xf32>
    %cst_14 = arith.constant 0.000000e+00 : f32
    %117 = vector.broadcast %cst_14 : f32 to vector<8x256xf32>
    %118 = arith.maximumf %116, %117 : vector<8x256xf32>
    %119 = vector.extract_strided_slice %118 {offsets = [0, 1], sizes = [8, 255], strides = [1, 1]} : vector<8x256xf32> to vector<8x255xf32>
    %120 = vector.extract_strided_slice %118 {offsets = [0, 0], sizes = [8, 1], strides = [1, 1]} : vector<8x256xf32> to vector<8x1xf32>
    %121 = tpu.concatenate %119, %120 in 1 : vector<8x255xf32>, vector<8x1xf32> -> vector<8x256xf32>
    %122 = vector.extract_strided_slice %118 {offsets = [0, 2], sizes = [8, 254], strides = [1, 1]} : vector<8x256xf32> to vector<8x254xf32>
    %123 = vector.extract_strided_slice %118 {offsets = [0, 0], sizes = [8, 2], strides = [1, 1]} : vector<8x256xf32> to vector<8x2xf32>
    %124 = tpu.concatenate %122, %123 in 1 : vector<8x254xf32>, vector<8x2xf32> -> vector<8x256xf32>
    %c6_15 = arith.constant 6 : index
    %125 = memref.load %arg4[%c6_15] : memref<24xf32, #tpu.memory_space<smem>>
    %126 = vector.broadcast %125 : f32 to vector<8x256xf32>
    %127 = arith.mulf %118, %126 : vector<8x256xf32>
    %128 = arith.addf %90, %127 : vector<8x256xf32>
    %c7_16 = arith.constant 7 : index
    %129 = memref.load %arg4[%c7_16] : memref<24xf32, #tpu.memory_space<smem>>
    %130 = vector.broadcast %129 : f32 to vector<8x256xf32>
    %131 = arith.mulf %121, %130 : vector<8x256xf32>
    %132 = arith.addf %128, %131 : vector<8x256xf32>
    %c8_17 = arith.constant 8 : index
    %133 = memref.load %arg4[%c8_17] : memref<24xf32, #tpu.memory_space<smem>>
    %134 = vector.broadcast %133 : f32 to vector<8x256xf32>
    %135 = arith.mulf %124, %134 : vector<8x256xf32>
    %136 = arith.addf %132, %135 : vector<8x256xf32>
    %c18 = arith.constant 18 : index
    %137 = memref.load %arg4[%c18] : memref<24xf32, #tpu.memory_space<smem>>
    %138 = vector.broadcast %137 : f32 to vector<8x256xf32>
    %139 = arith.mulf %118, %138 : vector<8x256xf32>
    %140 = arith.addf %102, %139 : vector<8x256xf32>
    %c19 = arith.constant 19 : index
    %141 = memref.load %arg4[%c19] : memref<24xf32, #tpu.memory_space<smem>>
    %142 = vector.broadcast %141 : f32 to vector<8x256xf32>
    %143 = arith.mulf %121, %142 : vector<8x256xf32>
    %144 = arith.addf %140, %143 : vector<8x256xf32>
    %c20 = arith.constant 20 : index
    %145 = memref.load %arg4[%c20] : memref<24xf32, #tpu.memory_space<smem>>
    %146 = vector.broadcast %145 : f32 to vector<8x256xf32>
    %147 = arith.mulf %124, %146 : vector<8x256xf32>
    %148 = arith.addf %144, %147 : vector<8x256xf32>
    %c9 = arith.constant 9 : index
    %149 = memref.load %arg2[%c9] : memref<12xf32, #tpu.memory_space<smem>>
    %150 = vector.broadcast %149 : f32 to vector<8x256xf32>
    %151 = arith.mulf %0, %150 : vector<8x256xf32>
    %c10 = arith.constant 10 : index
    %152 = memref.load %arg2[%c10] : memref<12xf32, #tpu.memory_space<smem>>
    %153 = vector.broadcast %152 : f32 to vector<8x256xf32>
    %154 = arith.mulf %3, %153 : vector<8x256xf32>
    %155 = arith.addf %151, %154 : vector<8x256xf32>
    %c11 = arith.constant 11 : index
    %156 = memref.load %arg2[%c11] : memref<12xf32, #tpu.memory_space<smem>>
    %157 = vector.broadcast %156 : f32 to vector<8x256xf32>
    %158 = arith.mulf %6, %157 : vector<8x256xf32>
    %159 = arith.addf %155, %158 : vector<8x256xf32>
    %c3_18 = arith.constant 3 : index
    %160 = memref.load %arg3[%c3_18] : memref<4xf32, #tpu.memory_space<smem>>
    %161 = vector.broadcast %160 : f32 to vector<8x256xf32>
    %162 = arith.addf %159, %161 : vector<8x256xf32>
    %cst_19 = arith.constant 0.000000e+00 : f32
    %163 = vector.broadcast %cst_19 : f32 to vector<8x256xf32>
    %164 = arith.maximumf %162, %163 : vector<8x256xf32>
    %165 = vector.extract_strided_slice %164 {offsets = [0, 1], sizes = [8, 255], strides = [1, 1]} : vector<8x256xf32> to vector<8x255xf32>
    %166 = vector.extract_strided_slice %164 {offsets = [0, 0], sizes = [8, 1], strides = [1, 1]} : vector<8x256xf32> to vector<8x1xf32>
    %167 = tpu.concatenate %165, %166 in 1 : vector<8x255xf32>, vector<8x1xf32> -> vector<8x256xf32>
    %168 = vector.extract_strided_slice %164 {offsets = [0, 2], sizes = [8, 254], strides = [1, 1]} : vector<8x256xf32> to vector<8x254xf32>
    %169 = vector.extract_strided_slice %164 {offsets = [0, 0], sizes = [8, 2], strides = [1, 1]} : vector<8x256xf32> to vector<8x2xf32>
    %170 = tpu.concatenate %168, %169 in 1 : vector<8x254xf32>, vector<8x2xf32> -> vector<8x256xf32>
    %c9_20 = arith.constant 9 : index
    %171 = memref.load %arg4[%c9_20] : memref<24xf32, #tpu.memory_space<smem>>
    %172 = vector.broadcast %171 : f32 to vector<8x256xf32>
    %173 = arith.mulf %164, %172 : vector<8x256xf32>
    %174 = arith.addf %136, %173 : vector<8x256xf32>
    %c10_21 = arith.constant 10 : index
    %175 = memref.load %arg4[%c10_21] : memref<24xf32, #tpu.memory_space<smem>>
    %176 = vector.broadcast %175 : f32 to vector<8x256xf32>
    %177 = arith.mulf %167, %176 : vector<8x256xf32>
    %178 = arith.addf %174, %177 : vector<8x256xf32>
    %c11_22 = arith.constant 11 : index
    %179 = memref.load %arg4[%c11_22] : memref<24xf32, #tpu.memory_space<smem>>
    %180 = vector.broadcast %179 : f32 to vector<8x256xf32>
    %181 = arith.mulf %170, %180 : vector<8x256xf32>
    %182 = arith.addf %178, %181 : vector<8x256xf32>
    %c21 = arith.constant 21 : index
    %183 = memref.load %arg4[%c21] : memref<24xf32, #tpu.memory_space<smem>>
    %184 = vector.broadcast %183 : f32 to vector<8x256xf32>
    %185 = arith.mulf %164, %184 : vector<8x256xf32>
    %186 = arith.addf %148, %185 : vector<8x256xf32>
    %c22 = arith.constant 22 : index
    %187 = memref.load %arg4[%c22] : memref<24xf32, #tpu.memory_space<smem>>
    %188 = vector.broadcast %187 : f32 to vector<8x256xf32>
    %189 = arith.mulf %167, %188 : vector<8x256xf32>
    %190 = arith.addf %186, %189 : vector<8x256xf32>
    %c23 = arith.constant 23 : index
    %191 = memref.load %arg4[%c23] : memref<24xf32, #tpu.memory_space<smem>>
    %192 = vector.broadcast %191 : f32 to vector<8x256xf32>
    %193 = arith.mulf %170, %192 : vector<8x256xf32>
    %194 = arith.addf %190, %193 : vector<8x256xf32>
    %cst_23 = arith.constant 0.000000e+00 : f32
    %195 = vector.broadcast %cst_23 : f32 to vector<8x256xf32>
    %196 = arith.maximumf %182, %195 : vector<8x256xf32>
    %c0_24 = arith.constant 0 : index
    %c0_25 = arith.constant 0 : index
    %c0_26 = arith.constant 0 : index
    %197 = vector.load %arg6[%c0_24, %c0_25, %c0_26] : memref<2x8x256xf32, #tpu.memory_space<vmem>>, vector<1x8x256xf32>
    %198 = vector.shape_cast %197 : vector<1x8x256xf32> to vector<8x256xf32>
    %cst_27 = arith.constant dense<0.000000e+00> : vector<8x8xf32>
    %199 = tpu.matmul %198, %196, %cst_27 {dimension_numbers = #tpu.dot_dimension_numbers<[1], [1], [0], [0], [0, 0, 1, 0], [], []>} : vector<8x256xf32>, vector<8x256xf32>, vector<8x8xf32> -> vector<8x8xf32>
    %cst_28 = arith.constant 0.000000e+00 : f32
    %200 = vector.broadcast %cst_28 : f32 to vector<8x256xf32>
    %201 = arith.maximumf %194, %200 : vector<8x256xf32>
    %c1_29 = arith.constant 1 : index
    %c0_30 = arith.constant 0 : index
    %c0_31 = arith.constant 0 : index
    %202 = vector.load %arg6[%c1_29, %c0_30, %c0_31] : memref<2x8x256xf32, #tpu.memory_space<vmem>>, vector<1x8x256xf32>
    %203 = vector.shape_cast %202 : vector<1x8x256xf32> to vector<8x256xf32>
    %cst_32 = arith.constant dense<0.000000e+00> : vector<8x8xf32>
    %204 = tpu.matmul %203, %201, %cst_32 {dimension_numbers = #tpu.dot_dimension_numbers<[1], [1], [0], [0], [0, 0, 1, 0], [], []>} : vector<8x256xf32>, vector<8x256xf32>, vector<8x8xf32> -> vector<8x8xf32>
    %205 = arith.addf %199, %204 : vector<8x8xf32>
    %c0_33 = arith.constant 0 : index
    %c0_34 = arith.constant 0 : index
    %206 = vector.load %arg7[%c0_33, %c0_34] : memref<8x1xf32, #tpu.memory_space<vmem>>, vector<8x1xf32>
    %207 = vector.broadcast %206 : vector<8x1xf32> to vector<8x8xf32>
    %208 = arith.addf %205, %207 : vector<8x8xf32>
    %c0_35 = arith.constant 0 : index
    %c0_36 = arith.constant 0 : index
    %209 = vector.load %arg8[%c0_35, %c0_36] : memref<8x8xf32, #tpu.memory_space<vmem>>, vector<8x8xf32>
    tpu.vector_store %arg8[%c0_35, %c0_36], %208 {strides = array<i32>} : memref<8x8xf32, #tpu.memory_space<vmem>>, vector<8x8xf32>,
    return
  }
  func.func @transform_0(%arg0: i32) -> (i32, i32) {
    %c0_i32 = arith.constant 0 : i32
    %c0_i32_0 = arith.constant 0 : i32
    return %arg0, %c0_i32 : i32, i32
  }
  func.func @transform_1(%arg0: i32) -> i32 {
    %c0_i32 = arith.constant 0 : i32
    %c0_i32_0 = arith.constant 0 : i32
    return %c0_i32 : i32
  }
  func.func @transform_2(%arg0: i32) -> i32 {
    %c0_i32 = arith.constant 0 : i32
    %c0_i32_0 = arith.constant 0 : i32
    return %c0_i32 : i32
  }
  func.func @transform_3(%arg0: i32) -> i32 {
    %c0_i32 = arith.constant 0 : i32
    %c0_i32_0 = arith.constant 0 : i32
    return %c0_i32 : i32
  }
  func.func @transform_4(%arg0: i32) -> i32 {
    %c0_i32 = arith.constant 0 : i32
    %c0_i32_0 = arith.constant 0 : i32
    return %c0_i32 : i32
  }
  func.func @transform_5(%arg0: i32) -> (i32, i32, i32) {
    %c0_i32 = arith.constant 0 : i32
    %c0_i32_0 = arith.constant 0 : i32
    %c0_i32_1 = arith.constant 0 : i32
    %c0_i32_2 = arith.constant 0 : i32
    return %c0_i32, %c0_i32_0, %c0_i32_1 : i32, i32, i32
  }
  func.func @transform_6(%arg0: i32) -> (i32, i32) {
    %c0_i32 = arith.constant 0 : i32
    %c0_i32_0 = arith.constant 0 : i32
    %c0_i32_1 = arith.constant 0 : i32
    return %c0_i32, %c0_i32_0 : i32, i32
  }
  func.func @transform_7(%arg0: i32) -> (i32, i32) {
    %c0_i32 = arith.constant 0 : i32
    %c0_i32_0 = arith.constant 0 : i32
    return %arg0, %c0_i32 : i32, i32
  }
}

</mosaic_0001>

<bundles_post_ra>
// kernel: tpu_custom_call.1
= control target key start
LH: loop header
LB: loop body
LE: loop exit
PB: predicated region body
PF: predicated region fallthrough
CT: control target
= control target key end

     0   :  { %12 = vsyncpa [#allocation3], 0  ;;  %s1124_s0 = inlined_call_operand.hbm [shape: f32[8,256], index: 0, kind: input, shape index: {}]   ;;  %s1125_s1 = inlined_call_operand.vmem [shape: f32[12], index: 1, kind: input, shape index: {}]   ;;  %s1126_s2 = inlined_call_operand.vmem [shape: f32[4], index: 2, kind: input, shape index: {}]   ;;  %s1127_s3 = inlined_call_operand.vmem [shape: f32[24], index: 3, kind: input, shape index: {}]   ;;  %s1128_s4 = inlined_call_operand.vmem [shape: f32[2], index: 4, kind: input, shape index: {}]   ;;  %s1129_s5 = inlined_call_operand.hbm [shape: f32[2,8,256], index: 5, kind: input, shape index: {}]   ;;  %s1130_s6 = inlined_call_operand.vmem [shape: f32[8,1], index: 6, kind: input, shape index: {}]   ;;  %s1131_s7 = inlined_call_operand.hbm [shape: f32[8,8], index: 7, kind: output, shape index: {}]  }
   0x1   :  { %13 = vsyncpa [#allocation5], 0 }
   0x2   :  { %14 = vsyncpa [#allocation8], 0 }
   0x3   :  { %15 = vsyncpa [#allocation11], 0 }
   0x4   :  { %16 = vsyncpa [#allocation13], 0  ;;  %s44_s26 = sshll.u32 %s1126_s2, 4  ;;  %s45_s26 = int_to_ptr.vmem [resolvable:$true] %s44_s26 }
   0x5   :  { %17 = vsyncpa [#allocation4], 0  ;;  %s669_s27 = scalar_lea.vmem %s45_s26, 16  ;;  %p674_p1 = scmp.lt.s32.totalorder %s45_s26, %s45_s26 }
   0x6   :  { %p670_p0 = scmp.ne.s32.totalorder %s45_s26, %s669_s27  ;;  %p675_p2 = scmp.lt.s32.totalorder %s669_s27, %s669_s27 }
   0x8   :  { %p676_p3 = por %p675_p2, %p674_p1 }
   0xa   :  { %p677_p4 = pnand %p676_p3, %p670_p0 }
   0xc   :  { %680 = shalt.err (!%p677_p4)
}
   0xd   :  { %s795_s28 = smov [#allocation7]   ;;  %s796_s29 = smov [#allocation2]  }
   0xe   :  { %47 = dma.vmem_to_smem %s45_s26, 16, %s795_s28, [#allocation8]  }
   0xf   :  { %s24_s30 = sshll.u32 %s796_s29, 4  ;;  %s34_s10 = sshll.u32 %s1125_s1, 4  ;;  %s25_s30 = int_to_ptr.vmem [resolvable:$true] %s24_s30  ;;  %s35_s10 = int_to_ptr.vmem [resolvable:$true] %s34_s10 }
  0x10   :  { %s681_s12 = scalar_lea.hbm %s1124_s0, 256 }
  0x11   :  { %p682_p5 = scmp.ne.s32.totalorder %s1124_s0, %s681_s12  ;;  %p685_p6 = scmp.lt.u32.totalorder %s681_s12, %s1124_s0 }
  0x13   :  { %p687_p7 = pnand %p685_p6, %p682_p5 }
  0x15   :  { %690 = shalt.err (!%p687_p7)
}
  0x16   :  { %s691_s17 = scalar_lea.vmem %s25_s30, 256  ;;  %p696_p9 = scmp.lt.s32.totalorder %s25_s30, %s25_s30 }
  0x17   :  { %p692_p8 = scmp.ne.s32.totalorder %s25_s30, %s691_s17  ;;  %p697_p10 = scmp.lt.s32.totalorder %s691_s17, %s691_s17 }
  0x19   :  { %p698_p11 = por %p697_p10, %p696_p9 }
  0x1b   :  { %p699_p12 = pnand %p698_p11, %p692_p8 }
  0x1d   :  { %702 = shalt.err (!%p699_p12)
}
  0x1e   :  { %27 = dma.hbm_to_vmem [thread:$0]  %s1124_s0, 256, %s25_s30, [#allocation3]  }
  0x1f   :  { %s54_s21 = sshll.u32 %s1127_s3, 4  ;;  %s703_s22 = scalar_lea.vmem %s35_s10, 16  ;;  %s55_s21 = int_to_ptr.vmem [resolvable:$true] %s54_s21 }
  0x20   :  { %p704_p13 = scmp.ne.s32.totalorder %s35_s10, %s703_s22  ;;  %p708_p0 = scmp.lt.s32.totalorder %s35_s10, %s35_s10 }
  0x21   :  { %p709_p1 = scmp.lt.s32.totalorder %s703_s22, %s703_s22 }
  0x23   :  { %p710_p2 = por %p709_p1, %p708_p0 }
  0x25   :  { %p711_p3 = pnand %p710_p2, %p704_p13 }
  0x27   :  { %714 = shalt.err (!%p711_p3)
}
  0x28   :  { %s797_s23 = smov [#allocation6]   ;;  %s715_s24 = scalar_lea.vmem %s55_s21, 16 }
  0x29   :  { %37 = dma.vmem_to_smem %s35_s10, 16, %s797_s23, [#allocation5]  }
  0x2a   :  { %p716_p4 = scmp.ne.s32.totalorder %s55_s21, %s715_s24  ;;  %p720_p5 = scmp.lt.s32.totalorder %s55_s21, %s55_s21 }
  0x2b   :  { %p721_p6 = scmp.lt.s32.totalorder %s715_s24, %s715_s24 }
  0x2d   :  { %p722_p7 = por %p721_p6, %p720_p5 }
  0x2f   :  { %p723_p8 = pnand %p722_p7, %p716_p4 }
  0x31   :  { %726 = shalt.err (!%p723_p8)
}
  0x32   :  { %s798_s0 = smov [#allocation9]   ;;  %s64_s26 = sshll.u32 %s1128_s4, 4  ;;  %s65_s26 = int_to_ptr.vmem [resolvable:$true] %s64_s26 }
  0x33   :  { %57 = dma.vmem_to_smem %s55_s21, 16, %s798_s0, [#allocation8]  }
  0x34   :  { %s727_s27 = scalar_lea.vmem %s65_s26, 16  ;;  %p732_p10 = scmp.lt.s32.totalorder %s65_s26, %s65_s26 }
  0x35   :  { %p728_p9 = scmp.ne.s32.totalorder %s65_s26, %s727_s27  ;;  %p733_p11 = scmp.lt.s32.totalorder %s727_s27, %s727_s27 }
  0x37   :  { %p734_p12 = por %p733_p11, %p732_p10 }
  0x39   :  { %p735_p13 = pnand %p734_p12, %p728_p9 }
  0x3b   :  { %738 = shalt.err (!%p735_p13)
}
  0x3c   :  { %s799_s28 = smov [#allocation10]   ;;  %s800_s29 = smov [#allocation12]  }
  0x3d   :  { %67 = dma.vmem_to_smem %s65_s26, 16, %s799_s28, [#allocation11]  }
  0x3e   :  { %s73_s30 = sshll.u32 %s800_s29, 4  ;;  %s739_s10 = scalar_lea.hbm %s1129_s5, 512  ;;  %s74_s30 = int_to_ptr.vmem [resolvable:$true] %s73_s30 }
  0x3f   :  { %p740_p0 = scmp.ne.s32.totalorder %s1129_s5, %s739_s10  ;;  %p743_p1 = scmp.lt.u32.totalorder %s739_s10, %s1129_s5 }
  0x41   :  { %p745_p2 = pnand %p743_p1, %p740_p0 }
  0x43   :  { %748 = shalt.err (!%p745_p2)
}
  0x44   :  { %s749_s13 = scalar_lea.vmem %s74_s30, 512  ;;  %p754_p4 = scmp.lt.s32.totalorder %s74_s30, %s74_s30 }
  0x45   :  { %p750_p3 = scmp.ne.s32.totalorder %s74_s30, %s749_s13  ;;  %p755_p5 = scmp.lt.s32.totalorder %s749_s13, %s749_s13 }
  0x47   :  { %p756_p6 = por %p755_p5, %p754_p4 }
  0x49   :  { %p757_p7 = pnand %p756_p6, %p750_p3 }
  0x4b   :  { %760 = shalt.err (!%p757_p7)
}
  0x4c   :  { %s801_s14 = smov 256   ;;  %s802_s15 = smov 16  }
  0x4d   :  { %79 = dma.hbm_to_vmem [thread:$0]  %s1129_s5, 512, %s74_s30, [#allocation13], %s801_s14, %s801_s14, %s802_s15  }
  0x4e   :  { %783 = dma.done.wait [#allocation3], 256  }
  0x4f   :  { %784 = vsyncadd [#allocation3], 4294967040 }
  0x50   :  { %785 = dma.done.wait [#allocation5], 16  }
  0x51   :  { %786 = vsyncadd [#allocation5], 4294967280 }
  0x52   :  { %787 = dma.done.wait [#allocation8], 32  }
  0x53   :  { %788 = vsyncadd [#allocation8], 4294967264 }
  0x54   :  { %789 = dma.done.wait [#allocation11], 16  }
  0x55   :  { %790 = vsyncadd [#allocation11], 4294967280 }
  0x56   :  { %791 = dma.done.wait [#allocation13], 512  }
  0x57   :  { %792 = vsyncadd [#allocation13], 4294966784 }
  0x58   :  { %100 = sfence }
  0x59   :  { %v883_v0 = vld [vmem:[#allocation2] sm:$0xff]  ;;  %s803_s1 = smov 126   ;;  %s804_s18 = smov 127   ;;  %v889_v1 = vld [vmem:[#allocation2 + $0x8] sm:$0xff]  ;;  %vm109_vm0 = vcmask 1039360   ;;  %vm119_vm1 = vcmask 1031168  }
  0x5a   :  { %115 = vrot.lane.b32.xlu1 %v883_v0, %s803_s1  ;;  %105 = vrot.lane.b32.xlu0 %v883_v0, %s804_s18  ;;  %s129_s5 = sld [smem:[#allocation6]]  ;;  %s626_s19 = sld [smem:[#allocation6 + $0x3]]  ;;  %vm597_vm2 = vcmask 64512  }
  0x5b   :  { %s619_s20 = sld [smem:[#allocation6 + $0x1]]  ;;  %s627_s21 = sld [smem:[#allocation6 + $0x4]] }
  0x5c   :  { %s895_s22 = sld [smem:[#allocation6 + $0x2]]  ;;  %s897_s23 = sld [smem:[#allocation6 + $0x5]] }
  0x5d   :  { %s899_s24 = sld [smem:[#allocation6 + $0x6]]  ;;  %s901_s0 = sld [smem:[#allocation6 + $0x7]] }
  0x5e   :  { %117 = vrot.lane.b32.xlu1 %v889_v1, %s803_s1  ;;  %107 = vrot.lane.b32.xlu0 %v889_v1, %s804_s18  ;;  %s903_s3 = sld [smem:[#allocation7]]  ;;  %s918_s25 = sld [smem:[#allocation7 + $0x1]] }
  0x5f   :  { %s920_s26 = sld [smem:[#allocation6 + $0x8]]  ;;  %s927_s27 = sld [smem:[#allocation6 + $0x9]] }
  0x60   :  { %v130_v4 = vstv %s129_s5  ;;  %v208_v6 = vstv %s626_s19  ;;  %s929_s28 = sld [smem:[#allocation6 + $0xa]]  ;;  %s648_s30 = sld [smem:[#allocation6 + $0xb]] }
  0x61   :  { %v134_v8 = vstv %s619_s20  ;;  %v212_v9 = vstv %s627_s21  ;;  %v132_v13 = vmul.f32 %v130_v4, %v889_v1  ;;  %v131_v14 = vmul.f32 %v130_v4, %v883_v0  ;;  %s941_s29 = sld [smem:[#allocation7 + $0x2]]  ;;  %s649_s8 = sld [smem:[#allocation7 + $0x3]] }
  0x62   :  { %v140_v12 = vstv %s895_s22  ;;  %v210_v17 = vmul.f32 %v208_v6, %v889_v1  ;;  %v209_v18 = vmul.f32 %v208_v6, %v883_v0  ;;  %v218_v27 = vstv %s897_s23  ;;  %s171_s2 = sld [smem:[#allocation9]]  ;;  %s1002_s4 = sld [smem:[#allocation10 + $0x1]] }
  0x63   :  { %v286_v28 = vstv %s899_s24  ;;  %v290_v29 = vstv %s901_s0  ;;  %s1000_s11 = sld [smem:[#allocation10]]  ;;  %s623_s12 = sld [smem:[#allocation9 + $0xc]] }
  0x64   :  { %v146_v30 = vstv %s903_s3  ;;  %v288_v39 = vmul.f32 %v286_v28, %v889_v1  ;;  %v287_v40 = vmul.f32 %v286_v28, %v883_v0  ;;  %v224_v47 = vstv %s918_s25  ;;  %s1004_s13 = sld [smem:[#allocation9 + $0x3]]  ;;  %s1006_s14 = sld [smem:[#allocation9 + $0xf]] }
  0x65   :  { %v296_v48 = vstv %s920_s26  ;;  %v364_v49 = vstv %s927_s27  ;;  %s1008_s15 = sld [smem:[#allocation9 + $0x6]]  ;;  %s1010_s16 = sld [smem:[#allocation9 + $0x12]] }
  0x66   :  { %v368_v50 = vstv %s929_s28  ;;  %v366_v57 = vmul.f32 %v364_v49, %v889_v1  ;;  %v365_v58 = vmul.f32 %v364_v49, %v883_v0  ;;  %v374_v4 = vstv %s648_s30  ;;  %s1014_s17 = sld [smem:[#allocation9 + $0xd]]  ;;  %s1020_s5 = sld [smem:[#allocation9 + $0x2]] }
  0x67   :  { %s1022_s19 = sld [smem:[#allocation9 + $0xe]]  ;;  %s1034_s20 = sld [smem:[#allocation9 + $0x4]] }
  0x68   :  { %s1036_s21 = sld [smem:[#allocation9 + $0x10]]  ;;  %s1044_s22 = sld [smem:[#allocation9 + $0x5]] }
  0x69   :  { %s1046_s23 = sld [smem:[#allocation9 + $0x11]]  ;;  %s1054_s24 = sld [smem:[#allocation9 + $0x7]] }
  0x6a   :  { %v250_v28 = vstv %s1004_s13  ;;  %s1056_s0 = sld [smem:[#allocation9 + $0x13]]  ;;  %s1062_s3 = sld [smem:[#allocation9 + $0x8]] }
  0x6b   :  { %s1064_s25 = sld [smem:[#allocation9 + $0x14]]  ;;  %s1077_s26 = sld [smem:[#allocation9 + $0xa]] }
  0x6c   :  { %s1079_s27 = sld [smem:[#allocation9 + $0x16]]  ;;  %s1084_s28 = sld [smem:[#allocation9 + $0xb]] }
  0x6d   :  { %s806_s30 = smov [#allocation14]  }
  0xcc   :  { %v116_v2 = vpop.permute.xlu1 %115  ;;  %v106_v3 = vpop.permute.xlu0 %105 }
  0xd0   :  { %v118_v5 = vpop.permute.xlu1 %117  ;;  %v108_v7 = vpop.permute.xlu0 %107 }
  0xd1   :  { %v110_v10 = vsel %vm109_vm0, %v106_v3, %v108_v7  ;;  %v114_v11 = vsel %vm109_vm0, %v108_v7, %v106_v3  ;;  %v911_v15 = vsel %vm119_vm1, %v116_v2, %v118_v5  ;;  %v914_v16 = vsel %vm119_vm1, %v118_v5, %v116_v2 }
  0xd2   :  { %v135_v19 = vmul.f32 %v134_v8, %v110_v10  ;;  %v136_v20 = vmul.f32 %v134_v8, %v114_v11  ;;  %v213_v21 = vmul.f32 %v212_v9, %v110_v10  ;;  %v214_v22 = vmul.f32 %v212_v9, %v114_v11 }
  0xd3   :  { %v141_v23 = vmul.f32 %v140_v12, %v911_v15  ;;  %v142_v24 = vmul.f32 %v140_v12, %v914_v16  ;;  %v219_v35 = vmul.f32 %v218_v27, %v911_v15  ;;  %v220_v36 = vmul.f32 %v218_v27, %v914_v16 }
  0xd4   :  { %v137_v25 = vadd.f32 %v135_v19, %v131_v14  ;;  %v138_v26 = vadd.f32 %v136_v20, %v132_v13  ;;  %v215_v33 = vadd.f32 %v213_v21, %v209_v18  ;;  %v216_v34 = vadd.f32 %v214_v22, %v210_v17  ;;  %v449_v18 = vld [vmem:[#allocation12 + $0x18] sm:$0xff]  ;;  %v444_v19 = vld [vmem:[#allocation12 + $0x8] sm:$0xff]  ;;  %v590_v21 = vld [vmem:[%s1130_s6] sm:$0xff]  ;;  %s1012_s6 = sld [smem:[#allocation9 + $0x1]] }
  0xd5   :  { %v291_v41 = vmul.f32 %v290_v29, %v110_v10  ;;  %v292_v42 = vmul.f32 %v290_v29, %v114_v11  ;;  %v297_v55 = vmul.f32 %v296_v48, %v911_v15  ;;  %v298_v56 = vmul.f32 %v296_v48, %v914_v16  ;;  %514 = vmatprep.mubr.f32.mxu0 %v449_v18 }
  0xd6   :  { %v143_v31 = vadd.f32 %v141_v23, %v137_v25  ;;  %v144_v32 = vadd.f32 %v142_v24, %v138_v26  ;;  %v221_v43 = vadd.f32 %v219_v35, %v215_v33  ;;  %v222_v44 = vadd.f32 %v220_v36, %v216_v34  ;;  %584 = vmatprep.mubr.f32.mxu1 %v444_v19 }
  0xd7   :  { %v293_v51 = vadd.f32 %v291_v41, %v287_v40  ;;  %v294_v52 = vadd.f32 %v292_v42, %v288_v39  ;;  %v369_v59 = vmul.f32 %v368_v50, %v110_v10  ;;  %v370_v60 = vmul.f32 %v368_v50, %v114_v11 }
  0xd8   :  { %v148_v37 = vadd.f32 %v146_v30, %v144_v32  ;;  %v147_v38 = vadd.f32 %v146_v30, %v143_v31  ;;  %v226_v53 = vadd.f32 %v224_v47, %v222_v44  ;;  %v225_v54 = vadd.f32 %v224_v47, %v221_v43 }
  0xd9   :  { %v299_v61 = vadd.f32 %v297_v55, %v293_v51  ;;  %v300_v62 = vadd.f32 %v298_v56, %v294_v52  ;;  %v302_v3 = vstv %s941_s29  ;;  %v371_v1 = vadd.f32 %v369_v59, %v365_v58  ;;  %s1086_s29 = sld [smem:[#allocation9 + $0x17]] }
  0xda   :  { %v936_v45 = vmax.f32 %v148_v37, 0.0  ;;  %v938_v46 = vmax.f32 %v147_v38, 0.0  ;;  %v958_v63 = vmax.f32 %v226_v53, 0.0  ;;  %v960_v2 = vmax.f32 %v225_v54, 0.0 }
  0xdb   :  { %v372_v5 = vadd.f32 %v370_v60, %v366_v57  ;;  %v304_v0 = vadd.f32 %v302_v3, %v300_v62  ;;  %v303_v6 = vadd.f32 %v302_v3, %v299_v61  ;;  %v375_v7 = vmul.f32 %v374_v4, %v911_v15 }
  0xdc   :  { %155 = vrot.lane.b32.xlu1 %v936_v45, %s804_s18  ;;  %153 = vrot.lane.b32.xlu0 %v938_v46, %s804_s18  ;;  %v376_v8 = vmul.f32 %v374_v4, %v914_v16  ;;  %v380_v13 = vstv %s649_s8  ;;  %v805_v20 = vmov 0   ;;  %v172_v22 = vstv %s171_s2  ;;  %s605_s8 = sshll.u32 %s806_s30, 4  ;;  %s606_s8 = int_to_ptr.vmem [resolvable:$true] %s605_s8 }
  0xdd   :  { %v377_v9 = vadd.f32 %v375_v7, %v371_v1  ;;  %v973_v11 = vmax.f32 %v304_v0, 0.0  ;;  %v975_v12 = vmax.f32 %v303_v6, 0.0  ;;  %668 = vset.pattern.permute.xlu0 %v805_v20  ;;  %v190_v23 = vstv %s623_s12  ;;  %s761_s9 = scalar_lea.vmem %s606_s8, 128  ;;  %p766_p9 = scmp.lt.s32.totalorder %s606_s8, %s606_s8 }
  0xde   :  { %v378_v10 = vadd.f32 %v376_v8, %v372_v5  ;;  %v174_v24 = vmul.f32 %v172_v22, %v936_v45  ;;  %v173_v25 = vmul.f32 %v172_v22, %v938_v46  ;;  %v126_v26 = vstv %s1000_s11  ;;  %p762_p8 = scmp.ne.s32.totalorder %s606_s8, %s761_s9  ;;  %p767_p10 = scmp.lt.s32.totalorder %s761_s9, %s761_s9 }
  0xdf   :  { %v381_v15 = vadd.f32 %v380_v13, %v377_v9  ;;  %v128_v27 = vstv %s1002_s4  ;;  %v268_v29 = vstv %s1006_s14  ;;  %v178_v30 = vstv %s1012_s6 }
  0xe0   :  { %164 = vrot.lane.b32.xlu1 %v936_v45, %s803_s1  ;;  %162 = vrot.lane.b32.xlu0 %v938_v46, %s803_s1  ;;  %v382_v14 = vadd.f32 %v380_v13, %v378_v10  ;;  %v192_v31 = vmul.f32 %v190_v23, %v936_v45  ;;  %v196_v32 = vstv %s1014_s17  ;;  %v191_v33 = vmul.f32 %v190_v23, %v938_v46  ;;  %p768_p11 = por %p767_p10, %p766_p9 }
  0xe1   :  { %v987_v17 = vmax.f32 %v381_v15, 0.0  ;;  %v328_v36 = vstv %s1008_s15  ;;  %v346_v37 = vstv %s1010_s16  ;;  %v176_v40 = vadd.f32 %v174_v24, %v126_v26 }
  0xe2   :  { %v985_v16 = vmax.f32 %v382_v14, 0.0  ;;  %v175_v43 = vadd.f32 %v173_v25, %v126_v26  ;;  %v194_v48 = vadd.f32 %v192_v31, %v128_v27  ;;  %v193_v49 = vadd.f32 %v191_v33, %v128_v27  ;;  %p769_p12 = pnand %p768_p11, %p762_p8 }
  0xe3   :  { %v184_v50 = vstv %s1020_s5  ;;  %v202_v51 = vstv %s1022_s19  ;;  %v251_v56 = vmul.f32 %v250_v28, %v960_v2  ;;  %v252_v57 = vmul.f32 %v250_v28, %v958_v63 }
  0xe4   :  { %233 = vrot.lane.b32.xlu1 %v958_v63, %s804_s18  ;;  %231 = vrot.lane.b32.xlu0 %v960_v2, %s804_s18  ;;  %v256_v5 = vstv %s1034_s20  ;;  %v269_v0 = vmul.f32 %v268_v29, %v960_v2  ;;  %v270_v6 = vmul.f32 %v268_v29, %v958_v63  ;;  %v274_v7 = vstv %s1036_s21 }
  0xe5   :  { %v262_v20 = vstv %s1044_s22  ;;  %v330_v31 = vmul.f32 %v328_v36, %v973_v11  ;;  %v348_v33 = vmul.f32 %v346_v37, %v973_v11 }
  0xe8   :  { %242 = vrot.lane.b32.xlu1 %v958_v63, %s803_s1  ;;  %240 = vrot.lane.b32.xlu0 %v960_v2, %s803_s1 }
  0xec   :  { %311 = vrot.lane.b32.xlu1 %v973_v11, %s804_s18  ;;  %309 = vrot.lane.b32.xlu0 %v975_v12, %s804_s18 }
  0xf0   :  { %320 = vrot.lane.b32.xlu1 %v973_v11, %s803_s1  ;;  %318 = vrot.lane.b32.xlu0 %v975_v12, %s803_s1 }
  0xf4   :  { %389 = vrot.lane.b32.xlu1 %v985_v16, %s804_s18  ;;  %387 = vrot.lane.b32.xlu0 %v987_v17, %s804_s18  ;;  %s1018_s18 = sld [smem:[#allocation9 + $0x9]] }
  0xf8   :  { %398 = vrot.lane.b32.xlu1 %v985_v16, %s803_s1  ;;  %396 = vrot.lane.b32.xlu0 %v987_v17, %s803_s1  ;;  %s1016_s1 = sld [smem:[#allocation9 + $0x15]] }
  0xfa   :  { %v406_v39 = vstv %s1018_s18 }
  0xfc   :  { %593 = vperm.xlu0 %668, %v590_v21   ;;  %v280_v21 = vstv %s1046_s23 }
  0xfe   :  { %v424_v38 = vstv %s1016_s1 }
 0x14e   :  { %v156_v34 = vpop.permute.xlu1 %155  ;;  %v154_v35 = vpop.permute.xlu0 %153 }
 0x14f   :  { %v157_v41 = vsel %vm109_vm0, %v154_v35, %v156_v34  ;;  %v161_v42 = vsel %vm109_vm0, %v156_v34, %v154_v35 }
 0x150   :  { %v179_v44 = vmul.f32 %v178_v30, %v157_v41  ;;  %v180_v45 = vmul.f32 %v178_v30, %v161_v42  ;;  %v197_v46 = vmul.f32 %v196_v32, %v157_v41  ;;  %v198_v47 = vmul.f32 %v196_v32, %v161_v42 }
 0x151   :  { %v329_v30 = vmul.f32 %v328_v36, %v975_v12  ;;  %v347_v32 = vmul.f32 %v346_v37, %v975_v12  ;;  %v352_v41 = vstv %s1056_s0 }
 0x152   :  { %v181_v52 = vadd.f32 %v179_v44, %v175_v43  ;;  %v182_v53 = vadd.f32 %v180_v45, %v176_v40  ;;  %v165_v54 = vpop.permute.xlu1 %164  ;;  %v163_v55 = vpop.permute.xlu0 %162  ;;  %v199_v58 = vadd.f32 %v197_v46, %v193_v49  ;;  %v200_v59 = vadd.f32 %v198_v47, %v194_v48 }
 0x153   :  { %v166_v60 = vsel %vm119_vm1, %v163_v55, %v165_v54  ;;  %v170_v61 = vsel %vm119_vm1, %v165_v54, %v163_v55  ;;  %v334_v40 = vstv %s1054_s24 }
 0x154   :  { %v185_v62 = vmul.f32 %v184_v50, %v166_v60  ;;  %v186_v3 = vmul.f32 %v184_v50, %v170_v61  ;;  %v203_v4 = vmul.f32 %v202_v51, %v166_v60  ;;  %v204_v1 = vmul.f32 %v202_v51, %v170_v61 }
 0x155   :  { %v340_v50 = vstv %s1062_s3  ;;  %v358_v51 = vstv %s1064_s25 }
 0x156   :  { %v187_v8 = vadd.f32 %v185_v62, %v181_v52  ;;  %v188_v9 = vadd.f32 %v186_v3, %v182_v53  ;;  %v205_v10 = vadd.f32 %v203_v4, %v199_v58  ;;  %v206_v13 = vadd.f32 %v204_v1, %v200_v59  ;;  %v234_v14 = vpop.permute.xlu1 %233  ;;  %v232_v15 = vpop.permute.xlu0 %231 }
 0x157   :  { %v235_v18 = vsel %vm109_vm0, %v232_v15, %v234_v14  ;;  %v239_v19 = vsel %vm109_vm0, %v234_v14, %v232_v15 }
 0x158   :  { %v254_v2 = vadd.f32 %v252_v57, %v188_v9  ;;  %v272_v63 = vadd.f32 %v270_v6, %v206_v13  ;;  %v253_v22 = vadd.f32 %v251_v56, %v187_v8  ;;  %v257_v23 = vmul.f32 %v256_v5, %v235_v18 }
 0x159   :  { %v258_v24 = vmul.f32 %v256_v5, %v239_v19  ;;  %v271_v25 = vadd.f32 %v269_v0, %v205_v10  ;;  %v275_v26 = vmul.f32 %v274_v7, %v235_v18  ;;  %v276_v27 = vmul.f32 %v274_v7, %v239_v19 }
 0x15a   :  { %v243_v28 = vpop.permute.xlu1 %242  ;;  %v241_v29 = vpop.permute.xlu0 %240  ;;  %v259_v34 = vadd.f32 %v257_v23, %v253_v22  ;;  %v426_v5 = vmul.f32 %v424_v38, %v985_v16  ;;  %v408_v0 = vmul.f32 %v406_v39, %v985_v16  ;;  %v425_v6 = vmul.f32 %v424_v38, %v987_v17 }
 0x15b   :  { %v244_v35 = vsel %vm119_vm1, %v241_v29, %v243_v28  ;;  %v277_v42 = vadd.f32 %v275_v26, %v271_v25  ;;  %v248_v43 = vsel %vm119_vm1, %v243_v28, %v241_v29  ;;  %v260_v45 = vadd.f32 %v258_v24, %v254_v2 }
 0x15c   :  { %v263_v44 = vmul.f32 %v262_v20, %v244_v35  ;;  %v281_v36 = vmul.f32 %v280_v21, %v244_v35  ;;  %v278_v12 = vadd.f32 %v276_v27, %v272_v63  ;;  %v264_v46 = vmul.f32 %v262_v20, %v248_v43 }
 0x15d   :  { %v282_v11 = vmul.f32 %v280_v21, %v248_v43  ;;  %v407_v7 = vmul.f32 %v406_v39, %v987_v17  ;;  %v412_v10 = vstv %s1077_s26  ;;  %v430_v13 = vstv %s1079_s27 }
 0x15e   :  { %v265_v37 = vadd.f32 %v263_v44, %v259_v34  ;;  %v283_v47 = vadd.f32 %v281_v36, %v277_v42  ;;  %v312_v48 = vpop.permute.xlu1 %311  ;;  %v310_v49 = vpop.permute.xlu0 %309  ;;  %v266_v52 = vadd.f32 %v264_v46, %v260_v45  ;;  %v418_v39 = vstv %s1084_s28 }
 0x15f   :  { %v284_v53 = vadd.f32 %v282_v11, %v278_v12  ;;  %v313_v54 = vsel %vm109_vm0, %v310_v49, %v312_v48  ;;  %v317_v55 = vsel %vm109_vm0, %v312_v48, %v310_v49  ;;  %v436_v23 = vstv %s1086_s29 }
 0x160   :  { %v331_v56 = vadd.f32 %v329_v30, %v265_v37  ;;  %v335_v57 = vmul.f32 %v334_v40, %v313_v54  ;;  %v336_v58 = vmul.f32 %v334_v40, %v317_v55  ;;  %v349_v59 = vadd.f32 %v347_v32, %v283_v47 }
 0x161   :  { %v332_v60 = vadd.f32 %v330_v31, %v266_v52  ;;  %v350_v61 = vadd.f32 %v348_v33, %v284_v53  ;;  %v353_v62 = vmul.f32 %v352_v41, %v313_v54  ;;  %v354_v3 = vmul.f32 %v352_v41, %v317_v55 }
 0x162   :  { %v321_v4 = vpop.permute.xlu1 %320  ;;  %v319_v1 = vpop.permute.xlu0 %318  ;;  %v337_v8 = vadd.f32 %v335_v57, %v331_v56  ;;  %v448_v56 = vld [vmem:[#allocation12 + $0x10] sm:$0xff]  ;;  %v443_v57 = vld [vmem:[#allocation12] sm:$0xff] }
 0x163   :  { %v322_v9 = vsel %vm119_vm1, %v319_v1, %v321_v4  ;;  %v355_v14 = vadd.f32 %v353_v62, %v349_v59  ;;  %v326_v15 = vsel %vm119_vm1, %v321_v4, %v319_v1  ;;  %v338_v20 = vadd.f32 %v336_v58, %v332_v60 }
 0x164   :  { %v341_v18 = vmul.f32 %v340_v50, %v322_v9  ;;  %v359_v19 = vmul.f32 %v358_v51, %v322_v9  ;;  %v356_v16 = vadd.f32 %v354_v3, %v350_v61  ;;  %v342_v21 = vmul.f32 %v340_v50, %v326_v15 }
 0x165   :  { %v360_v2 = vmul.f32 %v358_v51, %v326_v15 }
 0x166   :  { %v343_v38 = vadd.f32 %v341_v18, %v337_v8  ;;  %v361_v63 = vadd.f32 %v359_v19, %v355_v14  ;;  %v390_v22 = vpop.permute.xlu1 %389  ;;  %v388_v17 = vpop.permute.xlu0 %387  ;;  %v344_v24 = vadd.f32 %v342_v21, %v338_v20 }
 0x167   :  { %v362_v25 = vadd.f32 %v360_v2, %v356_v16  ;;  %v391_v26 = vsel %vm109_vm0, %v388_v17, %v390_v22  ;;  %v395_v27 = vsel %vm109_vm0, %v390_v22, %v388_v17 }
 0x168   :  { %v413_v28 = vmul.f32 %v412_v10, %v391_v26  ;;  %v414_v29 = vmul.f32 %v412_v10, %v395_v27  ;;  %v431_v30 = vmul.f32 %v430_v13, %v391_v26  ;;  %v432_v31 = vmul.f32 %v430_v13, %v395_v27 }
 0x169   :  { %v428_v32 = vadd.f32 %v426_v5, %v362_v25  ;;  %v410_v33 = vadd.f32 %v408_v0, %v344_v24  ;;  %v427_v34 = vadd.f32 %v425_v6, %v361_v63  ;;  %v409_v35 = vadd.f32 %v407_v7, %v343_v38 }
 0x16a   :  { %v399_v40 = vpop.permute.xlu1 %398  ;;  %v397_v41 = vpop.permute.xlu0 %396 }
 0x16b   :  { %v400_v42 = vsel %vm119_vm1, %v397_v41, %v399_v40  ;;  %v404_v43 = vsel %vm119_vm1, %v399_v40, %v397_v41  ;;  %v434_v44 = vadd.f32 %v432_v31, %v428_v32  ;;  %v416_v36 = vadd.f32 %v414_v29, %v410_v33 }
 0x16c   :  { %v419_v45 = vmul.f32 %v418_v39, %v400_v42  ;;  %v437_v12 = vmul.f32 %v436_v23, %v400_v42  ;;  %v438_v46 = vmul.f32 %v436_v23, %v404_v43  ;;  %v420_v11 = vmul.f32 %v418_v39, %v404_v43 }
 0x16d   :  { %v433_v37 = vadd.f32 %v431_v30, %v427_v34  ;;  %v415_v47 = vadd.f32 %v413_v28, %v409_v35 }
 0x16e   :  { %v440_v48 = vadd.f32 %v438_v46, %v434_v44  ;;  %v422_v49 = vadd.f32 %v420_v11, %v416_v36 }
 0x16f   :  { %v439_v50 = vadd.f32 %v437_v12, %v433_v37  ;;  %v421_v51 = vadd.f32 %v419_v45, %v415_v47 }
 0x170   :  { %v446_v52 = vmax.f32 %v440_v48, 0.0  ;;  %v442_v53 = vmax.f32 %v422_v49, 0.0 }
 0x171   :  { %v445_v54 = vmax.f32 %v439_v50, 0.0  ;;  %v441_v55 = vmax.f32 %v421_v51, 0.0 }
 0x172   :  { %450 = vmatprep.subr.mxu0 %v446_v52  ;;  %520 = vmatprep.subr.mxu1 %v442_v53 }
 0x173   :  { %451 = vmatpush1.xpose.msra.mxu0 %v445_v54  ;;  %521 = vmatpush1.xpose.msra.mxu1 %v441_v55 }
 0x176   :  { %515 = vmatmul.mubr.f32.vlgmr.msra.gmra.mrb[0].mxu0 %v448_v56  ;;  %585 = vmatmul.mubr.f32.vlgmr.msra.gmra.mrb[0].mxu1 %v443_v57 }
 0x17b   :  { %v594_v58 = vpop.permute.xlu0 %593 }
 0x249   :  { %v516_v59 = vpop.f32.mrb[0].mxu0  ;;  %v586_v60 = vpop.f32.mrb[0].mxu1 }
 0x24a   :  { %v587_v61 = vadd.f32 %v586_v60, %v516_v59  ;;  %v518_v62 = vpop.f32.mrb[1].mxu0  ;;  %v588_v3 = vpop.f32.mrb[1].mxu1 }
 0x24c   :  { %v596_v4 = vadd.f32 %v594_v58, %v587_v61 }
 0x24e   :  { %598 = vst.msk [vmem:[#allocation14] sm:$0xff] %vm597_vm2, %v596_v4 }
 0x24f   :  { %772 = shalt.err (!%p769_p12)
}
 0x250   :  { %s773_s11 = scalar_lea.hbm %s1131_s7, 128 }
 0x251   :  { %p774_p13 = scmp.ne.s32.totalorder %s1131_s7, %s773_s11  ;;  %p777_p0 = scmp.lt.u32.totalorder %s773_s11, %s1131_s7 }
 0x253   :  { %p779_p1 = pnand %p777_p0, %p774_p13 }
 0x255   :  { %782 = shalt.err (!%p779_p1)
}
 0x256   :  { %608 = dma.vmem_to_hbm [thread:$0]  %s606_s8, 128, %s1131_s7, [#allocation4]  }
 0x257   :  { %793 = dma.done.wait [#allocation4], 128  }
 0x258   :  { %794 = vsyncadd [#allocation4], 4294967168 }
 0x259   :  { %612 = vsyncpa [#allocation3], 1 }
 0x25a   :  { %613 = vsyncpa [#allocation13], 1 }
 0x25b   :  { %614 = vsyncpa [#allocation4], 1 }
 0x25c   :  { %615 = vsyncpa [#allocation5], 1 }
 0x25d   :  { %616 = vsyncpa [#allocation8], 1 }
 0x25e   :  { %617 = vsyncpa [#allocation11], 1 }

</bundles_post_ra>
